<compile_context>
chip_gen: v5e
topology: v5e:2x2
jax: 0.10.0
libtpu: 0.0.40
codegen_flags: <defaults>
</compile_context>

<pallas_src>
import math
import functools

import jax
import jax.numpy as jnp
from jax import lax
from jax.experimental import pallas as pl
from jax.experimental.pallas import tpu as pltpu


# ----------------------------- Pallas kernel --------------------------------
def _ipdf_kernel(imgs_ref,            # (B,) int32 SMEM (scalar prefetch; the gather happens in the index_map)
                 emb_ref,             # (1, 1, E)  gathered embedding row for this batch's image id
                 sin0_ref, cos0_ref,  # (1, N, 9)  sin(pi*R), cos(pi*R) for this batch
                 wimg_ref, bimg_ref,  # (E, H), (1, H)
                 wr_ref, br_ref,      # (2*L*9, H), (1, H)
                 wh_ref, bh_ref,      # (n_hidden, H, H), (n_hidden, 1, H)
                 wo_ref,              # (1, H)   final Linear(H, 1) weight row (bias dropped)
                 out_ref,             # (1, B) f32, resident across the grid (lane-dense)
                 *, N, L, n_hidden):
    del imgs_ref  # only used by the index_maps
    b = pl.program_id(0)

    @pl.when(b == 0)
    def _init():
        out_ref[...] = jnp.zeros_like(out_ref)

    # ---- image branch: img_linear(embedding row) -> (1, H) -----------------
    emb = emb_ref[0]                                                   # (1, E)
    img_h = jnp.dot(emb.astype(wimg_ref.dtype), wimg_ref[...],
                    preferred_element_type=jnp.float32) + bimg_ref[...]

    # ---- positional encoding, higher octaves via double-angle (VPU only) ---
    # torch order: [sin(2^0 pi R), cos(2^0 pi R), sin(2^1 pi R), cos(2^1 pi R), ...]
    s = sin0_ref[0]                                                    # (N, 9)
    c = cos0_ref[0]                                                    # (N, 9)
    parts = []
    for l in range(L):
        parts.append(s)
        parts.append(c)
        if l + 1 < L:
            s, c = 2.0 * s * c, c * c - s * s                          # sin(2x), cos(2x)
    enc = jnp.concatenate(parts, axis=-1)                              # (N, 2*L*9) f32

    # ---- rotation branch: one matmul over the full feature width -----------
    r_h = jnp.dot(enc.astype(wr_ref.dtype), wr_ref[...],
                  preferred_element_type=jnp.float32) + br_ref[...]    # (N, H)

    # ---- MLP over this batch's N rows (f32 elementwise, f32 accumulation) --
    x = jnp.maximum(r_h + img_h, 0.0)                                  # (N, H)
    for l in range(n_hidden):                                          # static, small
        x = jnp.maximum(
            jnp.dot(x.astype(wh_ref.dtype), wh_ref[l],
                    preferred_element_type=jnp.float32) + bh_ref[l], 0.0)

    # final Linear(H, 1) as a lane reduction; b_out cancels under the softmax.
    scores = jnp.sum(x * wo_ref[...], axis=-1, keepdims=True)          # (N, 1)

    # ---- per-batch softmax; only query 0 is consumed by forward() ----------
    m = jnp.max(scores)                                                # scalar
    e = jnp.exp(scores - m)                                            # (N, 1)
    denom = jnp.sum(e)                                                 # scalar (exact divide below)
    row = lax.broadcasted_iota(jnp.int32, (N, 1), 0)
    p0 = jnp.sum(jnp.where(row == 0, e, 0.0))                          # numerator of query 0
    inv_v = N / (math.pi ** 2)                                         # 1 / V,  V = pi^2 / N
    prob = p0 * inv_v / denom                                          # final answer for batch b

    # write one lane of the lane-dense (1, B) output
    lane = lax.broadcasted_iota(jnp.int32, out_ref.shape, 1)
    out_ref[...] += jnp.where(lane == b, prob, 0.0)


# ------------------------------- wrapper -------------------------------------
def ipdf_forward(imgs, Rs, params, *, L, mlp_layers, bf16_matmul=False):
    """imgs: (B,) int32 toy categories; Rs: (B, N, 9) float32.
    Returns (B,) = 1/V * softmax(scores, axis=1)[:, 0]  (== torch forward)."""
    B, N, _ = Rs.shape
    emb_table = params["emb_table"]
    n_cats, E = emb_table.shape
    H = params["w_img"].shape[1]
    n_hidden = mlp_layers - 1
    assert n_hidden >= 1
    R_feats = 2 * L * 9

    # Base-octave sin/cos only (the rest of the encoding is built in-kernel).
    Rs = Rs.astype(jnp.float32)
    sin0 = jnp.sin(jnp.pi * Rs)                                        # (B, N, 9)
    cos0 = jnp.cos(jnp.pi * Rs)                                        # (B, N, 9)

    if bf16_matmul:   # v6e/v7x: bf16 MXU operands, f32 accumulation & softmax
        w_img = params["w_img"].astype(jnp.bfloat16)
        w_r = params["w_r"].astype(jnp.bfloat16)
        w_h = params["w_h"].astype(jnp.bfloat16)
    else:
        w_img, w_r, w_h = params["w_img"], params["w_r"], params["w_h"]

    emb3 = emb_table.reshape(n_cats, 1, E)   # (n_cats, 1, E): (1,1,E) row-gather blocks

    kernel = functools.partial(_ipdf_kernel, N=N, L=L, n_hidden=n_hidden)

    grid_spec = pltpu.PrefetchScalarGridSpec(
        num_scalar_prefetch=1,
        grid=(B,),
        in_specs=[
            # embedding row gather driven by the prefetched image ids
            pl.BlockSpec((1, 1, E), lambda b, img_ids: (img_ids[b], 0, 0)),
            pl.BlockSpec((1, N, 9), lambda b, img_ids: (b, 0, 0)),     # sin(pi R)
            pl.BlockSpec((1, N, 9), lambda b, img_ids: (b, 0, 0)),     # cos(pi R)
            pl.BlockSpec((E, H), lambda b, img_ids: (0, 0)),           # w_img (VMEM-resident)
            pl.BlockSpec((1, H), lambda b, img_ids: (0, 0)),           # b_img
            pl.BlockSpec((R_feats, H), lambda b, img_ids: (0, 0)),     # w_r
            pl.BlockSpec((1, H), lambda b, img_ids: (0, 0)),           # b_r
            pl.BlockSpec((n_hidden, H, H), lambda b, img_ids: (0, 0, 0)),  # w_h
            pl.BlockSpec((n_hidden, 1, H), lambda b, img_ids: (0, 0, 0)),  # b_h
            pl.BlockSpec((1, H), lambda b, img_ids: (0, 0)),           # w_out_row
        ],
        # single lane-dense (1, B) output block, resident across the grid
        out_specs=pl.BlockSpec((1, B), lambda b, img_ids: (0, 0)),
    )

    out = pl.pallas_call(
        kernel,
        out_shape=jax.ShapeDtypeStruct((1, B), jnp.float32),
        grid_spec=grid_spec,
        # The output block is revisited by every step -> the grid axis must be
        # "arbitrary".  When scaling up, block the output per batch and mark
        # the batch / row-tile axes "parallel" for v7x's two TensorCores.
        compiler_params=pltpu.CompilerParams(dimension_semantics=("arbitrary",)),
    )(imgs, emb3, sin0, cos0,
      w_img, params["b_img"], w_r, params["b_r"],
      w_h, params["b_h"], params["w_out_row"])

    return out[0]                                                      # (B,)


# --------------------------- pure-JAX reference -------------------------------
def ipdf_reference(imgs, Rs, params, *, L, mlp_layers):
    B, N, _ = Rs.shape
    emb = params["emb_table"][imgs]                                    # (B, E)
    enc = []
    for l in range(L):
        enc.append(jnp.sin((2.0 ** l) * jnp.pi * Rs))
        enc.append(jnp.cos((2.0 ** l) * jnp.pi * Rs))
    enc = jnp.concatenate(enc, axis=-1)                                # (B, N, 2*L*9)
    x = (emb @ params["w_img"] + params["b_img"])[:, None, :] \
        + enc @ params["w_r"] + params["b_r"]                          # (B, N, H)
    x = jax.nn.relu(x)
    for l in range(mlp_layers - 1):
        x = jax.nn.relu(x @ params["w_h"][l] + params["b_h"][l])
    scores = jnp.sum(x * params["w_out_row"], axis=-1) + params["b_out"][0, 0]
    probs = jax.nn.softmax(scores, axis=1)
    V = jnp.pi ** 2 / N
    return probs[:, 0] / V


# ---------------------------------- main --------------------------------------
if __name__ == "__main__":
    # toy_args = {'is_toy': True, 'max_pow': 4, 'visual_embedding_size': 32}
    # L = 2, n_hidden_nodes = 32, mlp_layers = 2
    B, N = 2, 8
    n_cats, E, H, L, mlp_layers = 5, 32, 32, 2, 2
    R_feats = 2 * L * 9
    n_hidden = mlp_layers - 1

    key = jax.random.PRNGKey(0)
    ks = jax.random.split(key, 10)
    params = {
        "emb_table": 0.1 * jax.random.normal(ks[0], (n_cats, E), jnp.float32),
        "w_img":     0.1 * jax.random.normal(ks[1], (E, H), jnp.float32),
        "b_img":     0.1 * jax.random.normal(ks[2], (1, H), jnp.float32),
        "w_r":       0.1 * jax.random.normal(ks[3], (R_feats, H), jnp.float32),
        "b_r":       0.1 * jax.random.normal(ks[4], (1, H), jnp.float32),
        "w_h":       0.1 * jax.random.normal(ks[5], (n_hidden, H, H), jnp.float32),
        "b_h":       0.1 * jax.random.normal(ks[6], (n_hidden, 1, H), jnp.float32),
        "w_out_row": 0.1 * jax.random.normal(ks[7], (1, H), jnp.float32),
        "b_out":     0.1 * jax.random.normal(ks[8], (1, 1), jnp.float32),
    }

    imgs = jax.random.randint(ks[9], (B,), 0, n_cats, dtype=jnp.int32)
    Rs = jax.random.uniform(jax.random.PRNGKey(1), (B, N, 9),
                            dtype=jnp.float32, minval=-1.0, maxval=1.0)

    ref = jax.block_until_ready(
        ipdf_reference(imgs, Rs, params, L=L, mlp_layers=mlp_layers))

    # f32 matmul path: tight check (exact divide in the softmax; double-angle
    # encoding agrees with direct sin/cos to ~1e-7).
    out_f32 = jax.block_until_ready(
        ipdf_forward(imgs, Rs, params, L=L, mlp_layers=mlp_layers,
                     bf16_matmul=False))
    assert out_f32.shape == (B,)
    assert jnp.allclose(out_f32, ref, rtol=1e-4, atol=1e-6), (out_f32, ref)

    # bf16 MXU-operand path (v6e/v7x perf item): smoke-check with a loose
    # tolerance covering bf16 weight/activation rounding through three matmuls.
    out_bf16 = jax.block_until_ready(
        ipdf_forward(imgs, Rs, params, L=L, mlp_layers=mlp_layers,
                     bf16_matmul=True))
    assert out_bf16.shape == (B,)
    assert jnp.allclose(out_bf16, ref, rtol=1e-1, atol=1e-3), (out_bf16, ref)

    print("KERNEL_OK")
</pallas_src>

<mosaic_0001>
module attributes {stable_mosaic.version = 11 : i64} {
  func.func @_ipdf_kernel(%arg0: i32, %arg1: memref<2xi32, #tpu.memory_space<smem>>, %arg2: memref<1x1x32xf32, #tpu.memory_space<vmem>>, %arg3: memref<1x8x9xf32, #tpu.memory_space<vmem>>, %arg4: memref<1x8x9xf32, #tpu.memory_space<vmem>>, %arg5: memref<32x32xf32, #tpu.memory_space<vmem>>, %arg6: memref<1x32xf32, #tpu.memory_space<vmem>>, %arg7: memref<36x32xf32, #tpu.memory_space<vmem>>, %arg8: memref<1x32xf32, #tpu.memory_space<vmem>>, %arg9: memref<1x32x32xf32, #tpu.memory_space<vmem>>, %arg10: memref<1x1x32xf32, #tpu.memory_space<vmem>>, %arg11: memref<1x32xf32, #tpu.memory_space<vmem>>, %arg12: memref<1x2xf32, #tpu.memory_space<vmem>>) attributes {dimension_semantics = [#tpu.dimension_semantics<arbitrary>], iteration_bounds = array<i64: 2>, scalar_prefetch = 1 : i64, scratch_operands = 0 : i64, tpu.core_type = #tpu.core_type<tc>, window_params = [{transform_indices = @transform_0, window_bounds = array<i64: 1, 1, 32>}, {transform_indices = @transform_1, window_bounds = array<i64: 1, 8, 9>}, {transform_indices = @transform_2, window_bounds = array<i64: 1, 8, 9>}, {pipeline_mode = #tpu.pipeline_mode<synchronous>, transform_indices = @transform_3, window_bounds = array<i64: 32, 32>}, {pipeline_mode = #tpu.pipeline_mode<synchronous>, transform_indices = @transform_4, window_bounds = array<i64: 1, 32>}, {pipeline_mode = #tpu.pipeline_mode<synchronous>, transform_indices = @transform_5, window_bounds = array<i64: 36, 32>}, {pipeline_mode = #tpu.pipeline_mode<synchronous>, transform_indices = @transform_6, window_bounds = array<i64: 1, 32>}, {pipeline_mode = #tpu.pipeline_mode<synchronous>, transform_indices = @transform_7, window_bounds = array<i64: 1, 32, 32>}, {pipeline_mode = #tpu.pipeline_mode<synchronous>, transform_indices = @transform_8, window_bounds = array<i64: 1, 1, 32>}, {pipeline_mode = #tpu.pipeline_mode<synchronous>, transform_indices = @transform_9, window_bounds = array<i64: 1, 32>}, {pipeline_mode = #tpu.pipeline_mode<synchronous>, transform_indices = @transform_10, window_bounds = array<i64: 1, 2>}]} {
    %c0_i32 = arith.constant 0 : i32
    %0 = arith.cmpi eq, %arg0, %c0_i32 : i32
    %1 = arith.extui %0 : i1 to i32
    %c0_i32_0 = arith.constant 0 : i32
    %2 = arith.cmpi ne, %1, %c0_i32_0 : i32
    scf.if %2 {
      %cst_42 = arith.constant 0.000000e+00 : f32
      %74 = vector.broadcast %cst_42 : f32 to vector<1x2xf32>
      %c0_43 = arith.constant 0 : index
      %c0_44 = arith.constant 0 : index
      %75 = vector.load %arg12[%c0_43, %c0_44] : memref<1x2xf32, #tpu.memory_space<vmem>>, vector<1x2xf32>
      tpu.vector_store %arg12[%c0_43, %c0_44], %74 {strides = array<i32>} : memref<1x2xf32, #tpu.memory_space<vmem>>, vector<1x2xf32>,
    } else {
    }
    %c0 = arith.constant 0 : index
    %c0_1 = arith.constant 0 : index
    %c0_2 = arith.constant 0 : index
    %3 = vector.load %arg2[%c0, %c0_1, %c0_2] : memref<1x1x32xf32, #tpu.memory_space<vmem>>, vector<1x1x32xf32>
    %4 = vector.shape_cast %3 : vector<1x1x32xf32> to vector<1x32xf32>
    %c0_3 = arith.constant 0 : index
    %c0_4 = arith.constant 0 : index
    %5 = vector.load %arg5[%c0_3, %c0_4] : memref<32x32xf32, #tpu.memory_space<vmem>>, vector<32x32xf32>
    %cst = arith.constant dense<0.000000e+00> : vector<1x32xf32>
    %6 = tpu.matmul %4, %5, %cst {dimension_numbers = #tpu.dot_dimension_numbers<[1], [0], [0], [1], [0, 0, 1, 1], [], []>} : vector<1x32xf32>, vector<32x32xf32>, vector<1x32xf32> -> vector<1x32xf32>
    %c0_5 = arith.constant 0 : index
    %c0_6 = arith.constant 0 : index
    %7 = vector.load %arg6[%c0_5, %c0_6] : memref<1x32xf32, #tpu.memory_space<vmem>>, vector<1x32xf32>
    %8 = arith.addf %6, %7 : vector<1x32xf32>
    %c0_7 = arith.constant 0 : index
    %c0_8 = arith.constant 0 : index
    %c0_9 = arith.constant 0 : index
    %9 = vector.load %arg3[%c0_7, %c0_8, %c0_9] : memref<1x8x9xf32, #tpu.memory_space<vmem>>, vector<1x8x9xf32>
    %10 = vector.shape_cast %9 : vector<1x8x9xf32> to vector<8x9xf32>
    %c0_10 = arith.constant 0 : index
    %c0_11 = arith.constant 0 : index
    %c0_12 = arith.constant 0 : index
    %11 = vector.load %arg4[%c0_10, %c0_11, %c0_12] : memref<1x8x9xf32, #tpu.memory_space<vmem>>, vector<1x8x9xf32>
    %12 = vector.shape_cast %11 : vector<1x8x9xf32> to vector<8x9xf32>
    %cst_13 = arith.constant 2.000000e+00 : f32
    %13 = vector.broadcast %cst_13 : f32 to vector<8x9xf32>
    %14 = arith.mulf %13, %10 : vector<8x9xf32>
    %15 = arith.mulf %14, %12 : vector<8x9xf32>
    %16 = arith.mulf %12, %12 : vector<8x9xf32>
    %17 = arith.mulf %10, %10 : vector<8x9xf32>
    %18 = arith.subf %16, %17 : vector<8x9xf32>
    %19 = tpu.concatenate %10, %12, %15, %18 in 1 : vector<8x9xf32>, vector<8x9xf32>, vector<8x9xf32>, vector<8x9xf32> -> vector<8x36xf32>
    %c0_14 = arith.constant 0 : index
    %c0_15 = arith.constant 0 : index
    %20 = vector.load %arg7[%c0_14, %c0_15] : memref<36x32xf32, #tpu.memory_space<vmem>>, vector<36x32xf32>
    %cst_16 = arith.constant dense<0.000000e+00> : vector<8x32xf32>
    %21 = tpu.matmul %19, %20, %cst_16 {dimension_numbers = #tpu.dot_dimension_numbers<[1], [0], [0], [1], [0, 0, 1, 1], [], []>} : vector<8x36xf32>, vector<36x32xf32>, vector<8x32xf32> -> vector<8x32xf32>
    %c0_17 = arith.constant 0 : index
    %c0_18 = arith.constant 0 : index
    %22 = vector.load %arg8[%c0_17, %c0_18] : memref<1x32xf32, #tpu.memory_space<vmem>>, vector<1x32xf32>
    %23 = vector.broadcast %22 : vector<1x32xf32> to vector<8x32xf32>
    %24 = arith.addf %21, %23 : vector<8x32xf32>
    %25 = vector.broadcast %8 : vector<1x32xf32> to vector<8x32xf32>
    %26 = arith.addf %24, %25 : vector<8x32xf32>
    %cst_19 = arith.constant 0.000000e+00 : f32
    %27 = vector.broadcast %cst_19 : f32 to vector<8x32xf32>
    %28 = arith.maximumf %26, %27 : vector<8x32xf32>
    %c0_20 = arith.constant 0 : index
    %c0_21 = arith.constant 0 : index
    %c0_22 = arith.constant 0 : index
    %29 = vector.load %arg9[%c0_20, %c0_21, %c0_22] : memref<1x32x32xf32, #tpu.memory_space<vmem>>, vector<1x32x32xf32>
    %30 = vector.shape_cast %29 : vector<1x32x32xf32> to vector<32x32xf32>
    %cst_23 = arith.constant dense<0.000000e+00> : vector<8x32xf32>
    %31 = tpu.matmul %28, %30, %cst_23 {dimension_numbers = #tpu.dot_dimension_numbers<[1], [0], [0], [1], [0, 0, 1, 1], [], []>} : vector<8x32xf32>, vector<32x32xf32>, vector<8x32xf32> -> vector<8x32xf32>
    %c0_24 = arith.constant 0 : index
    %c0_25 = arith.constant 0 : index
    %c0_26 = arith.constant 0 : index
    %32 = vector.load %arg10[%c0_24, %c0_25, %c0_26] : memref<1x1x32xf32, #tpu.memory_space<vmem>>, vector<1x1x32xf32>
    %33 = vector.shape_cast %32 : vector<1x1x32xf32> to vector<1x32xf32>
    %34 = vector.broadcast %33 : vector<1x32xf32> to vector<8x32xf32>
    %35 = arith.addf %31, %34 : vector<8x32xf32>
    %cst_27 = arith.constant 0.000000e+00 : f32
    %36 = vector.broadcast %cst_27 : f32 to vector<8x32xf32>
    %37 = arith.maximumf %35, %36 : vector<8x32xf32>
    %c0_28 = arith.constant 0 : index
    %c0_29 = arith.constant 0 : index
    %38 = vector.load %arg11[%c0_28, %c0_29] : memref<1x32xf32, #tpu.memory_space<vmem>>, vector<1x32xf32>
    %39 = vector.broadcast %38 : vector<1x32xf32> to vector<8x32xf32>
    %40 = arith.mulf %37, %39 : vector<8x32xf32>
    %cst_30 = arith.constant dense<0.000000e+00> : vector<8xf32>
    %41 = vector.multi_reduction <add>, %40, %cst_30 [1] : vector<8x32xf32> to vector<8xf32>
    %42 = vector.shape_cast %41 : vector<8xf32> to vector<8x1xf32>
    %43 = vector.shape_cast %42 : vector<8x1xf32> to vector<1x8x1xf32>
    %cst_31 = arith.constant dense<0xFF800000> : vector<1xf32>
    %44 = vector.multi_reduction <maximumf>, %43, %cst_31 [1, 2] : vector<1x8x1xf32> to vector<1xf32>
    %45 = vector.shape_cast %44 : vector<1xf32> to vector<1x1x1xf32>
    %46 = vector.extract %45[0, 0, 0] : f32 from vector<1x1x1xf32>
    %47 = vector.broadcast %46 : f32 to vector<8x1xf32>
    %48 = arith.subf %42, %47 : vector<8x1xf32>
    %49 = math.exp %48 : vector<8x1xf32>
    %50 = vector.shape_cast %49 : vector<8x1xf32> to vector<1x8x1xf32>
    %cst_32 = arith.constant dense<0.000000e+00> : vector<1xf32>
    %51 = vector.multi_reduction <add>, %50, %cst_32 [1, 2] : vector<1x8x1xf32> to vector<1xf32>
    %52 = vector.shape_cast %51 : vector<1xf32> to vector<1x1x1xf32>
    %53 = vector.extract %52[0, 0, 0] : f32 from vector<1x1x1xf32>
    %54 = tpu.iota {dimensions = array<i32: 0>} : vector<8x1xi32>
    %c0_i32_33 = arith.constant 0 : i32
    %55 = vector.broadcast %c0_i32_33 : i32 to vector<8x1xi32>
    %56 = arith.cmpi eq, %54, %55 : vector<8x1xi32>
    %cst_34 = arith.constant 0.000000e+00 : f32
    %57 = vector.broadcast %cst_34 : f32 to vector<8x1xf32>
    %58 = arith.select %56, %49, %57 : vector<8x1xi1>, vector<8x1xf32>
    %59 = vector.shape_cast %58 : vector<8x1xf32> to vector<1x8x1xf32>
    %cst_35 = arith.constant dense<0.000000e+00> : vector<1xf32>
    %60 = vector.multi_reduction <add>, %59, %cst_35 [1, 2] : vector<1x8x1xf32> to vector<1xf32>
    %61 = vector.shape_cast %60 : vector<1xf32> to vector<1x1x1xf32>
    %62 = vector.extract %61[0, 0, 0] : f32 from vector<1x1x1xf32>
    %cst_36 = arith.constant 0.810569465 : f32
    %63 = arith.mulf %62, %cst_36 : f32
    %64 = arith.divf %63, %53 : f32
    %65 = tpu.iota {dimensions = array<i32: 1>} : vector<1x2xi32>
    %c0_37 = arith.constant 0 : index
    %c0_38 = arith.constant 0 : index
    %66 = vector.load %arg12[%c0_37, %c0_38] : memref<1x2xf32, #tpu.memory_space<vmem>>, vector<1x2xf32>
    %67 = vector.broadcast %arg0 : i32 to vector<1x2xi32>
    %68 = arith.cmpi eq, %65, %67 : vector<1x2xi32>
    %cst_39 = arith.constant 0.000000e+00 : f32
    %69 = vector.broadcast %64 : f32 to vector<1x2xf32>
    %70 = vector.broadcast %cst_39 : f32 to vector<1x2xf32>
    %71 = arith.select %68, %69, %70 : vector<1x2xi1>, vector<1x2xf32>
    %72 = arith.addf %66, %71 : vector<1x2xf32>
    %c0_40 = arith.constant 0 : index
    %c0_41 = arith.constant 0 : index
    %73 = vector.load %arg12[%c0_40, %c0_41] : memref<1x2xf32, #tpu.memory_space<vmem>>, vector<1x2xf32>
    tpu.vector_store %arg12[%c0_40, %c0_41], %72 {strides = array<i32>} : memref<1x2xf32, #tpu.memory_space<vmem>>, vector<1x2xf32>,
    return
  }
  func.func @transform_0(%arg0: i32, %arg1: memref<2xi32, #tpu.memory_space<smem>>) -> (i32, i32, i32) {
    %0 = arith.index_cast %arg0 : i32 to index
    %1 = memref.load %arg1[%0] : memref<2xi32, #tpu.memory_space<smem>>
    %c0_i32 = arith.constant 0 : i32
    %c0_i32_0 = arith.constant 0 : i32
    %c0_i32_1 = arith.constant 0 : i32
    return %1, %c0_i32, %c0_i32_0 : i32, i32, i32
  }
  func.func @transform_1(%arg0: i32, %arg1: memref<2xi32, #tpu.memory_space<smem>>) -> (i32, i32, i32) {
    %c0_i32 = arith.constant 0 : i32
    %c0_i32_0 = arith.constant 0 : i32
    %c0_i32_1 = arith.constant 0 : i32
    return %arg0, %c0_i32, %c0_i32_0 : i32, i32, i32
  }
  func.func @transform_2(%arg0: i32, %arg1: memref<2xi32, #tpu.memory_space<smem>>) -> (i32, i32, i32) {
    %c0_i32 = arith.constant 0 : i32
    %c0_i32_0 = arith.constant 0 : i32
    %c0_i32_1 = arith.constant 0 : i32
    return %arg0, %c0_i32, %c0_i32_0 : i32, i32, i32
  }
  func.func @transform_3(%arg0: i32, %arg1: memref<2xi32, #tpu.memory_space<smem>>) -> (i32, i32) {
    %c0_i32 = arith.constant 0 : i32
    %c0_i32_0 = arith.constant 0 : i32
    %c0_i32_1 = arith.constant 0 : i32
    return %c0_i32, %c0_i32_0 : i32, i32
  }
  func.func @transform_4(%arg0: i32, %arg1: memref<2xi32, #tpu.memory_space<smem>>) -> (i32, i32) {
    %c0_i32 = arith.constant 0 : i32
    %c0_i32_0 = arith.constant 0 : i32
    %c0_i32_1 = arith.constant 0 : i32
    return %c0_i32, %c0_i32_0 : i32, i32
  }
  func.func @transform_5(%arg0: i32, %arg1: memref<2xi32, #tpu.memory_space<smem>>) -> (i32, i32) {
    %c0_i32 = arith.constant 0 : i32
    %c0_i32_0 = arith.constant 0 : i32
    %c0_i32_1 = arith.constant 0 : i32
    return %c0_i32, %c0_i32_0 : i32, i32
  }
  func.func @transform_6(%arg0: i32, %arg1: memref<2xi32, #tpu.memory_space<smem>>) -> (i32, i32) {
    %c0_i32 = arith.constant 0 : i32
    %c0_i32_0 = arith.constant 0 : i32
    %c0_i32_1 = arith.constant 0 : i32
    return %c0_i32, %c0_i32_0 : i32, i32
  }
  func.func @transform_7(%arg0: i32, %arg1: memref<2xi32, #tpu.memory_space<smem>>) -> (i32, i32, i32) {
    %c0_i32 = arith.constant 0 : i32
    %c0_i32_0 = arith.constant 0 : i32
    %c0_i32_1 = arith.constant 0 : i32
    %c0_i32_2 = arith.constant 0 : i32
    return %c0_i32, %c0_i32_0, %c0_i32_1 : i32, i32, i32
  }
  func.func @transform_8(%arg0: i32, %arg1: memref<2xi32, #tpu.memory_space<smem>>) -> (i32, i32, i32) {
    %c0_i32 = arith.constant 0 : i32
    %c0_i32_0 = arith.constant 0 : i32
    %c0_i32_1 = arith.constant 0 : i32
    %c0_i32_2 = arith.constant 0 : i32
    return %c0_i32, %c0_i32_0, %c0_i32_1 : i32, i32, i32
  }
  func.func @transform_9(%arg0: i32, %arg1: memref<2xi32, #tpu.memory_space<smem>>) -> (i32, i32) {
    %c0_i32 = arith.constant 0 : i32
    %c0_i32_0 = arith.constant 0 : i32
    %c0_i32_1 = arith.constant 0 : i32
    return %c0_i32, %c0_i32_0 : i32, i32
  }
  func.func @transform_10(%arg0: i32, %arg1: memref<2xi32, #tpu.memory_space<smem>>) -> (i32, i32) {
    %c0_i32 = arith.constant 0 : i32
    %c0_i32_0 = arith.constant 0 : i32
    %c0_i32_1 = arith.constant 0 : i32
    return %c0_i32, %c0_i32_0 : i32, i32
  }
}

</mosaic_0001>

<bundles_post_ra>
// kernel: tpu_custom_call.1
= control target key start
LH: loop header
LB: loop body
LE: loop exit
PB: predicated region body
PF: predicated region fallthrough
CT: control target
= control target key end

     0   :  { %s966_s20 = smov [#allocation3]   ;;  %s1228_s0 = inlined_call_operand.vmem [shape: s32[2], index: 0, kind: input, shape index: {}]   ;;  %s1229_s1 = inlined_call_operand.vmem [shape: f32[5,1,32], index: 1, kind: input, shape index: {}]   ;;  %s1230_s2 = inlined_call_operand.hbm [shape: f32[2,8,9], index: 2, kind: input, shape index: {}]   ;;  %s1231_s3 = inlined_call_operand.hbm [shape: f32[2,8,9], index: 3, kind: input, shape index: {}]   ;;  %s1232_s4 = inlined_call_operand.vmem [shape: f32[32,32], index: 4, kind: input, shape index: {}]   ;;  %s1233_s5 = inlined_call_operand.vmem [shape: f32[1,32], index: 5, kind: input, shape index: {}]   ;;  %s1234_s6 = inlined_call_operand.vmem [shape: f32[36,32], index: 6, kind: input, shape index: {}]   ;;  %s1235_s7 = inlined_call_operand.vmem [shape: f32[1,32], index: 7, kind: input, shape index: {}]   ;;  %s1236_s8 = inlined_call_operand.vmem [shape: f32[1,32,32], index: 8, kind: input, shape index: {}]   ;;  %s1237_s9 = inlined_call_operand.vmem [shape: f32[1,1,32], index: 9, kind: input, shape index: {}]   ;;  %s1238_s10 = inlined_call_operand.vmem [shape: f32[1,32], index: 10, kind: input, shape index: {}]   ;;  %s1239_s11 = inlined_call_operand.hbm [shape: f32[1,2], index: 11, kind: output, shape index: {}]  }
   0x1   :  { %1243 = sst [smem:[#allocation17_spill]] %s1230_s2  ;;  %s17_s19 = sshll.u32 %s1228_s0, 4  ;;  %s18_s19 = int_to_ptr.vmem [resolvable:$true] %s17_s19 }
   0x2   :  { %20 = dma.vmem_to_smem %s18_s19, 16, %s966_s20, [#allocation2] }
   0x3   :  { %936 = dma.done.wait [#allocation2], 16 }
   0x4   :  { %937 = vsyncadd [#allocation2], 4294967280 }
   0x5   :  { %23 = sfence }
   0x6   :  { %24 = vsyncpa [#allocation5], 0 }
   0x7   :  { %26 = vsyncpa [#allocation5 + $0x1], 0 }
   0x8   :  { %27 = vsyncpa [#allocation8], 0 }
   0x9   :  { %29 = vsyncpa [#allocation8 + $0x1], 0 }
   0xa   :  { %30 = vsyncpa [#allocation6], 0  ;;  %s1035_s21 = smov 0   ;;  %s1037_s22 = smov 0  }
   0xb   :  { %s1039_s23 = smov 0   ;;  %s1041_s24 = smov 0  }
   0xc LB: > { %1244 = sst [smem:[#allocation14_spill]] %s960_s23  ;;  %s1054_s0 = sadd.s32 4294967295, %s964_s24   ;;  %s964_s24 = sphi %s1041_s24, %s1252_s24   ;;  %s960_s23 = sphi %s1039_s23, %s1254_s23   ;;  %s956_s22 = sphi %s1037_s22, %s1256_s22   ;;  %s952_s21 = sphi %s1035_s21, %s1255_s21  }
   0xd   : > { %s1057_s25 = sadd.s32 1, %s964_s24   ;;  %s71_s27 = sadd.s32 1, %s960_s23 }
   0xe   : > { %1245 = sst [smem:[#allocation15_spill]] %s1057_s25  ;;  %s68_s26 = ssub.s32 %s964_s24, %s1057_s25 }
   0xf   : > { %p69_p0 = scmp.eq.s32.totalorder %s68_s26, 0  ;;  %p78_p1 = scmp.ne.s32.totalorder %s960_s23, %s956_s22 }
  0x10   : > { %p79_p2 = scmp.eq.s32.totalorder %s964_s24, 0  ;;  %p84_p3 = scmp.ne.s32.totalorder %s956_s22, %s952_s21 }
  0x11   : > { %s1067_s28 = scalar_select %p69_p0, %s960_s23, %s71_s27  }
  0x12   : > { %p1069_p4 = por %p79_p2, %p78_p1  ;;  %p85_p5 = scmp.eq.s32.totalorder %s1054_s0, 0 }
  0x13   : > { %1246 = sst [smem:[#allocation16_spill]] %s1067_s28  ;;  %p772_p6 = scmp.lt.s32.totalorder %s964_s24, 2 }
  0x14   : > { %p1075_p7 = por %p85_p5, %p84_p3  ;;  %s1080_s12 = sand.u32 1, %s960_s23  }
  0x15   : > { %s733_s13 = sshll.u32 %s1080_s12, 3  ;;  %s734_s14 = sshll.u32 %s964_s24, 3 }
  0x16   : > { %s1249_s2 = sld [smem:[#allocation17_spill]]  ;;  %s335_s18 = scalar_lea.vmem [#allocation4], %s733_s13 }
  0x17   : > { %s343_s19 = sshll.u32 %s335_s18, 4  ;;  %p1089_p8 = pnand %p772_p6, %p1069_p4  ;;  %s344_s19 = int_to_ptr.vmem [resolvable:$true] %s343_s19 }
  0x18   : > { %p737_p9 = scmp.ge.s32.totalorder %s964_s24, 1  ;;  %p367_p10 = scmp.lt.s32.totalorder %s964_s24, 3 }
  0x19   : > { %s332_s26 = scalar_lea.sflag [#allocation5], %s1080_s12  ;;  %p836_p12 = pneg %p1089_p8 }
  0x1c   : > { %s339_s17 = scalar_lea.hbm %s1249_s2, %s734_s14  ;;  %s839_s16 = scalar_lea.hbm %s1249_s2, 16 }
  0x1d   : > { %s341_s20 = sshll.u32 %s339_s17, 4  ;;  %s342_s20 = int_to_ptr.hbm [resolvable:$true] %s341_s20 }
  0x1e   : > { %s832_s27 = sshra.s32 %s342_s20, 4  ;;  %s833_s27 = int_to_ptr.hbm [resolvable:$true] %s832_s27 }
  0x1f   : > { %s834_s28 = scalar_lea.hbm %s833_s27, 8  ;;  %p840_p1 = scmp.lt.s32.totalorder %s833_s27, %s1249_s2 }
  0x20   : > { %p835_p11 = scmp.ne.s32.totalorder %s833_s27, %s834_s28  ;;  %p841_p2 = scmp.lt.s32.totalorder %s839_s16, %s834_s28 }
  0x22   : > { %p837_p13 = pnand %p836_p12, %p835_p11  ;;  %p842_p3 = por %p841_p2, %p840_p1 }
  0x24   : > { %p838_p0 = pneg %p837_p13 }
  0x26   : > { %p843_p4 = pnand %p842_p3, %p838_p0 }
  0x28   : > { %846 = shalt.err (!%p843_p4)
}
  0x29   : > { %768 = dma.hbm_to_vmem [thread:$0]  (!%p1089_p8), %s342_s20, 128, %s344_s19, %s332_s26  }
  0x2a   : > { %p1113_p5 = pnand %p737_p9, %p367_p10  ;;  %s358_s28 = scalar_lea.hbm %s1231_s3, %s734_s14 }
  0x2b   : > { %s354_s27 = scalar_lea.vmem [#allocation7], %s733_s13  ;;  %s360_s18 = sshll.u32 %s358_s28, 4  ;;  %s361_s18 = int_to_ptr.hbm [resolvable:$true] %s360_s18 }
  0x2c   : > { %s362_s16 = sshll.u32 %s354_s27, 4  ;;  %s351_s2 = scalar_lea.sflag [#allocation8], %s1080_s12  ;;  %s363_s16 = int_to_ptr.vmem [resolvable:$true] %s362_s16 }
  0x2d   : > { %s862_s23 = sshra.s32 %s361_s18, 4  ;;  %s869_s20 = scalar_lea.hbm %s1231_s3, 16  ;;  %s863_s23 = int_to_ptr.hbm [resolvable:$true] %s862_s23 }
  0x2e   : > { %s864_s25 = scalar_lea.hbm %s863_s23, 8  ;;  %p870_p11 = scmp.lt.s32.totalorder %s863_s23, %s1231_s3 }
  0x2f   : > { %p865_p6 = scmp.ne.s32.totalorder %s863_s23, %s864_s25  ;;  %p871_p13 = scmp.lt.s32.totalorder %s869_s20, %s864_s25 }
  0x31   : > { %p867_p9 = pnand %p865_p6, %p836_p12  ;;  %p872_p0 = por %p871_p13, %p870_p11 }
  0x33   : > { %p868_p10 = pneg %p867_p9 }
  0x35   : > { %p873_p1 = pnand %p872_p0, %p868_p10 }
  0x37   : > { %876 = shalt.err (!%p873_p1)
}
  0x38   : > { %771 = dma.hbm_to_vmem [thread:$0]  (!%p1089_p8), %s361_s18, 128, %s363_s16, %s351_s2  }
  0x39   : > { %371 = sbr.rel (%p1113_p5) target bundleno = 921 (0x399), region = 60  ;;  %s373_s12 = sand.u32 (!%p1113_p5), 1, %s956_s22  }
  0x3a   : > { %s738_s13 = sshll.u32 (!%p1113_p5), %s373_s12, 3  ;;  %s374_s15 = scalar_lea.sflag (!%p1113_p5), [#allocation5], %s373_s12 }
  0x3b   : > { %s377_s17 = scalar_lea.vmem (!%p1113_p5), [#allocation4], %s738_s13 }
  0x3e   : > { %939 = dma.done.wait (%p1075_p7), %s374_s15, 128  }
  0x3f   : > { %941 = vsyncadd (%p1075_p7), %s374_s15, 4294967168  ;;  %s384_s23 = scalar_lea.sflag [#allocation8], %s373_s12  ;;  %s387_s25 = scalar_lea.vmem [#allocation7], %s738_s13 }
  0x40   : > { %943 = dma.done.wait (%p1075_p7), %s384_s23, 128  }
  0x41   : > { %945 = vsyncadd (%p1075_p7), %s384_s23, 4294967168  ;;  %s429_s2 = sld [smem:[#allocation3 + %s1054_s0]]  ;;  %p740_p12 = scmp.ne.s32.totalorder %s1054_s0, 0 }
  0x46   : > { %437 = sbr.rel (%p740_p12) target bundleno = 77 (0x4d), region = 72 }
  0x47   : > { %p430_p8 = scmp.lt.s32.totalorder %s429_s2, 4 }
  0x49   : > { %s1258_s2 = smov (!%p430_p8, %s429_s2), 4 }
  0x4a   : > { %s432_s28 = scalar_lea.vmem %s1229_s1, %s1258_s2 }
  0x4b   : > { %vm438_vm0 = vcmask 8192   ;;  %v967_v0 = vmov 0.0  }
  0x4c   : > { %439 = vst.msk [vmem:[#allocation9] sm:$0x1] %vm438_vm0, %v967_v0 }
  0x4d PF: > { %v471_v1 = vld [vmem:[%s387_s25] sm:$0xff]  ;;  %v470_v2 = vld [vmem:[%s377_s17] sm:$0xff]  ;;  %s968_s30 = smov 9   ;;  %s969_s27 = smov 27   ;;  %vm508_vm1 = vcmask 1043456   ;;  %vm446_vm2 = vcmask 261120   ;;  %v597_v54 = vlaneseq }
  0x4e   : > { %478 = vrot.lane.b32.xlu0 %v471_v1, %s968_s30  ;;  %v472_v3 = vmul.f32 2.0, %v470_v2  ;;  %v474_v4 = vmul.f32 %v471_v1, %v471_v1  ;;  %v475_v5 = vmul.f32 %v470_v2, %v470_v2  ;;  %s970_s16 = smov 18   ;;  %v444_v8 = vld [vmem:[%s1232_s4 + $0x18] sm:$0xff]  ;;  %v499_v9 = vld [vmem:[%s1234_s6 + $0x20] sm:$0xf]  ;;  %v443_v10 = vld [vmem:[%s1232_s4 + $0x10] sm:$0xff] }
  0x4f   : > { %462 = vmatpush.msra.mxu0 %v444_v8  ;;  %742 = vmatpush.msk.msra.mxu1 %vm508_vm1, %v499_v9  ;;  %v498_v11 = vld [vmem:[%s1234_s6 + $0x18] sm:$0xff]  ;;  %v442_v12 = vld [vmem:[%s1232_s4 + $0x8] sm:$0xff]  ;;  %v497_v13 = vld [vmem:[%s1234_s6 + $0x10] sm:$0xff]  ;;  %vm489_vm3 = vcmask 72704   ;;  %vm491_vm4 = vcmask 146432   ;;  %vm493_vm5 = vcmask 220160  }
  0x50   : > { %v476_v6 = vsub.f32 %v474_v4, %v475_v5  ;;  %v473_v7 = vmul.f32 %v472_v3, %v471_v1  ;;  %v496_v14 = vld [vmem:[%s1234_s6 + $0x8] sm:$0xff]  ;;  %v441_v15 = vld [vmem:[%s1232_s4] sm:$0xff]  ;;  %vm504_vm6 = vcmask 293888   ;;  %v538_v24 = vld [vmem:[%s1236_s8 + $0x18] sm:$0xff]  ;;  %vm586_vm7 = vcmask 7168   ;;  %s971_s26 = smov [#allocation9]  }
  0x51   : > { %463 = vmatpush.msra.mxu0 %v443_v10  ;;  %524 = vmatpush.msra.mxu1 %v498_v11  ;;  %v440_v16 = vld [vmem:[%s432_s28] sm:$0x1]  ;;  %v537_v25 = vld [vmem:[%s1236_s8 + $0x10] sm:$0xff]  ;;  %v536_v26 = vld [vmem:[%s1236_s8 + $0x8] sm:$0xff]  ;;  %v598_v55 = vshrl.u32 %v597_v54, 7  ;;  %s645_s14 = sshll.u32 %s971_s26, 4  ;;  %s646_s14 = int_to_ptr.vmem [resolvable:$true] %s645_s14 }
  0x52   : > { %486 = vrot.lane.b32.xlu1 %v476_v6, %s969_s27  ;;  %v495_v17 = vld [vmem:[%s1234_s6] sm:$0xff]  ;;  %558 = vmatpush.msra.mxu2 %v538_v24  ;;  %s647_s15 = sshll.u32 %s1239_s11, 4  ;;  %vm637_vm14 = vcmask 8192   ;;  %p773_p7 = scmp.eq.s32.totalorder %s1054_s0, 1  ;;  %s648_s15 = int_to_ptr.hbm [resolvable:$true] %s647_s15 }
  0x53   : > { %464 = vmatpush.msra.mxu0 %v442_v12  ;;  %525 = vmatpush.msra.mxu1 %v497_v13  ;;  %v535_v27 = vld [vmem:[%s1236_s8] sm:$0xff]  ;;  %vm599_vm8 = vcmp.eq.s32.totalorder %v598_v55, 0 }
  0x54   : > { %559 = vmatpush.msra.mxu2 %v537_v25  ;;  %v445_v28 = vld [vmem:[%s1233_s5] sm:$0x1] }
  0x55   : > { %526 = vmatpush.msra.mxu1 %v496_v14  ;;  %465 = vmatpush.msra.mxu0 %v441_v15  ;;  %v813_v31 = vld [vmem:[%s1235_s7] ss:$0 sm:$0xff] }
  0x56   : > { %482 = vrot.lane.b32.xlu0 %v473_v7, %s970_s16  ;;  %741 = vmatmul.msk.f32.vlgmr.msra.gmra.mxu0 %vm446_vm2, %v440_v16  ;;  %v814_v37 = vld [vmem:[%s1237_s9] ss:$0 sm:$0xff] }
  0x57   : > { %527 = vmatpush.msra.mxu1 %v495_v17  ;;  %560 = vmatpush.msra.mxu2 %v536_v26  ;;  %v815_v40 = vld [vmem:[%s1238_s10] ss:$0 sm:$0xff] }
  0x59   : > { %561 = vmatpush.msra.mxu2 %v535_v27 }
  0xc0   : > { %v479_v18 = vpop.permute.xlu0 %478 }
  0xc1   : > { %v490_v20 = vsel %vm489_vm3, %v470_v2, %v479_v18 }
  0xc4   : > { %v487_v19 = vpop.permute.xlu1 %486 }
  0xc8   : > { %v483_v21 = vpop.permute.xlu0 %482 }
  0xc9   : > { %v492_v22 = vsel %vm491_vm4, %v490_v20, %v483_v21  ;;  %v630_v21 = vand.u32 127, %v597_v54 }
  0xca   : > { %v494_v23 = vsel %vm493_vm5, %v492_v22, %v487_v19  ;;  %v632_v22 = vstv %s1054_s0 }
  0xcb   : > { %743 = vmatmul.msk.f32.vlgmr.msra.gmra.mxu1 %vm504_vm6, %v494_v23  ;;  %vm633_vm13 = vcmp.eq.s32.totalorder %v630_v21, %v632_v22  ;;  %v631_v23 = vld [vmem:[#allocation9] sm:$0x1] }
  0xd3   : > { %v467_v29 = vpop.f32.mrf.mxu0 }
  0xd4   : > { %v468_v30 = vadd.f32 %v467_v29, %v445_v28 }
  0xd6   : > { %v532_v32 = vperm.slane %v468_v30, 0 }
 0x148   : > { %v529_v33 = vpop.f32.mrf.mxu1 }
 0x149   : > { %v530_v34 = vadd.f32 %v813_v31, %v529_v33 }
 0x14b   : > { %v533_v35 = vadd.f32 %v532_v32, %v530_v34 }
 0x14d   : > { %v534_v36 = vmax.f32 %v533_v35, 0.0 }
 0x14f   : > { %744 = vmatmul.msk.f32.vlgmr.msra.gmra.mxu2 %vm446_vm2, %v534_v36 }
 0x1d2   : > { %v563_v38 = vpop.f32.mrf.mxu2 }
 0x1d3   : > { %v564_v39 = vadd.f32 %v814_v37, %v563_v38 }
 0x1d5   : > { %v566_v41 = vmax.f32 %v564_v39, 0.0 }
 0x1d7   : > { %v571_v42 = vmul.f32 %v815_v40, %v566_v41 }
 0x1d9   : > { %v572_v43 = vsel %vm446_vm2, %v571_v42, 0.0 }
 0x1da   : > { %573 = vadd.xlane.f32.xlu1 %v572_v43 }
 0x24d   : > { %v574_v44 = vpop.xlane.xlu1 %573 }
 0x24e   : > { %v575_v45 = vrot.slane %v574_v44, 4 }
 0x250   : > { %v576_v46 = vmax.f32 %v574_v44, %v575_v45 }
 0x252   : > { %v577_v47 = vrot.slane %v576_v46, 2 }
 0x254   : > { %v578_v48 = vmax.f32 %v576_v46, %v577_v47 }
 0x256   : > { %v579_v49 = vrot.slane %v578_v48, 1 }
 0x258   : > { %v580_v50 = vmax.f32 %v578_v48, %v579_v49 }
 0x25a   : > { %749 = vpush %v580_v50 }
 0x28b   : > { %s750_s18 = spop %749 }
 0x28c   : > { %v582_v51 = vstv %s750_s18 }
 0x28d   : > { %v583_v52 = vsub.f32 %v574_v44, %v582_v51 }
 0x28f   : > { %v584_v53 = vmul.f32 1.442695, %v583_v52 }
 0x291   : > { %816 = vpow2.f32 %v584_v53 }
 0x297   : > { %v817_v56 = vpop.eup %816 }
 0x298   : > { %v587_v57 = vsel %vm586_vm7, %v817_v56, 0.0  ;;  %v600_v58 = vsel %vm599_vm8, %v817_v56, 0.0 }
 0x299   : > { %588 = vadd.xlane.f32.xlu2 %v587_v57  ;;  %v601_v59 = vsel %vm586_vm7, %v600_v58, 0.0 }
 0x2a1   : > { %602 = vadd.xlane.f32.xlu2 %v601_v59 }
 0x30c   : > { %v589_v60 = vpop.xlane.xlu2 %588 }
 0x30d   : > { %v590_v61 = vrot.slane %v589_v60, 4 }
 0x30f   : > { %v591_v62 = vadd.f32 %v590_v61, %v589_v60 }
 0x311   : > { %v592_v63 = vrot.slane %v591_v62, 2 }
 0x313   : > { %v593_v0 = vadd.f32 %v592_v63, %v591_v62 }
 0x314   : > { %v603_v1 = vpop.xlane.xlu2 %602 }
 0x315   : > { %v604_v2 = vrot.slane %v603_v1, 4  ;;  %v594_v3 = vrot.slane %v593_v0, 1 }
 0x317   : > { %v605_v4 = vadd.f32 %v604_v2, %v603_v1  ;;  %v595_v5 = vadd.f32 %v594_v3, %v593_v0 }
 0x319   : > { %v606_v6 = vrot.slane %v605_v4, 2  ;;  %751 = vpush %v595_v5 }
 0x31b   : > { %v607_v7 = vadd.f32 %v606_v6, %v605_v4 }
 0x31d   : > { %v608_v8 = vrot.slane %v607_v7, 1 }
 0x31f   : > { %v609_v9 = vadd.f32 %v608_v8, %v607_v7 }
 0x321   : > { %753 = vpush %v609_v9 }
 0x34a   : > { %s752_s24 = spop %751 }
 0x34b   : > { %v612_v10 = vstv %s752_s24 }
 0x34c   : > { %818 = vrcp.f32 %v612_v10  ;;  %v624_v14 = vand.u32 2147483648, %v612_v10  ;;  %v622_v16 = vand.u32 2147483647, %v612_v10  ;;  %vm618_vm10 = vweird.f32 %v612_v10 }
 0x34e   : > { %v625_v18 = vor.u32 1.1754944e-38, %v624_v14  ;;  %vm623_vm12 = vcmp.eq.f32.partialorder %v622_v16, 8.507059e+37 }
 0x352   : > { %v819_v11 = vpop.eup %818  ;;  %s754_s19 = spop %753 }
 0x353   : > { %v614_v12 = vmul.f32 %v819_v11, %v612_v10  ;;  %vm619_vm9 = vweird.f32 %v819_v11  ;;  %s611_s2 = smul.f32 0.81056947, %s754_s19 }
 0x354   : > { %vm620_vm11 = vmor %vm618_vm10, %vm619_vm9 }
 0x355   : > { %v615_v13 = vsub.f32 1.0, %v614_v12 }
 0x357   : > { %v616_v15 = vmul.f32 %v819_v11, %v615_v13 }
 0x359   : > { %v617_v17 = vadd.f32 %v819_v11, %v616_v15 }
 0x35b   : > { %v621_v19 = vsel %vm620_vm11, %v819_v11, %v617_v17 }
 0x35c   : > { %v626_v20 = vsel %vm623_vm12, %v625_v18, %v621_v19 }
 0x35d   : > { %755 = vpush %v626_v20 }
 0x38e   : > { %s756_s28 = spop %755 }
 0x38f   : > { %s628_s20 = smul.f32 %s756_s28, %s611_s2 }
 0x391   : > { %v634_v24 = vstv %s628_s20 }
 0x392   : > { %v635_v25 = vsel %vm633_vm13, %v634_v24, 0.0 }
 0x393   : > { %v636_v26 = vadd.f32 %v635_v25, %v631_v23 }
 0x395   : > { %638 = vst.msk [vmem:[#allocation9] sm:$0x1] %vm637_vm14, %v636_v26 }
 0x396   : > { %762 = dma.vmem_to_hbm [thread:$0]  (%p773_p7), %s646_s14, 16, %s648_s15, [#allocation6]  }
 0x397   : > { %947 = dma.done.wait (%p773_p7), [#allocation6], 16  }
 0x398   : > { %949 = vsyncadd (%p773_p7), [#allocation6], 4294967280 }
 0x399 PF: > { %s1252_s24 = sld [smem:[#allocation15_spill]]  ;;  %s1255_s21 = smov %s956_s22 }
 0x39a   : > { %s1253_s17 = sld [smem:[#allocation14_spill]] }
 0x39b   : > { %s1254_s23 = sld [smem:[#allocation16_spill]] }
 0x39f   : > { %p33_p2 = scmp.ge.s32.totalorder %s1252_s24, 4  }
 0x3a0   : > { %s1256_s22 = smov %s1253_s17 }
 0x3a1   :  { %35 = sbr.rel (!%p33_p2) target bundleno = 12 (0xc), region = 117 }
 0x3a6   :  { %661 = vsyncpa [#allocation5], 1 }
 0x3a7   :  { %663 = vsyncpa [#allocation5 + $0x1], 1 }
 0x3a8   :  { %664 = vsyncpa [#allocation8], 1 }
 0x3a9   :  { %666 = vsyncpa [#allocation8 + $0x1], 1 }
 0x3aa   :  { %667 = vsyncpa [#allocation6], 1 }
 0x3ab   :  { %669 = vsyncpa [#allocation6 + $0x1], 1 }

</bundles_post_ra>
